<compile_context>
chip_gen: v5e
topology: v5e:2x2
jax: 0.10.0
libtpu: 0.0.40
codegen_flags: <defaults>
</compile_context>

<pallas_src>
import functools

import jax
import jax.numpy as jnp
from jax.experimental import pallas as pl
from jax.experimental.pallas import tpu as pltpu

_EPS = 1e-5


def _fused_kernel(x_ref, sel_ref, o_ref, stats_ref, *, inv_count, pad, C):
    """Fused BN-stats / normalize+resize kernel.

    grid = (2, NB):
      phase 0 (p==0): accumulate per-channel [sum, sumsq] into stats_ref (VMEM),
                      finalize to [mean, inv_std] at the last N block.
      phase 1 (p==1): normalize, fuse the stride-2 H/W subsample via a single
                      selection matmul, fuse the channel zero-pad into the store.

    x_ref:     (Bn, C, H*W)        one batch tile; H*W lane-dense.
    sel_ref:   (H*W, H2*W2)        0/1 selection matrix (resident).
    o_ref:     (Bn, C_out, H2*W2)  lane-dense padded/downsampled output tile.
    stats_ref: (C, 2)              VMEM scratch, persists across the grid.
    """
    p = pl.program_id(0)
    n = pl.program_id(1)

    @pl.when(p == 0)
    def _stats_phase():
        @pl.when(n == 0)
        def _init():
            stats_ref[...] = jnp.zeros_like(stats_ref)

        x = x_ref[...].astype(jnp.float32)                         # (Bn, C, HW)
        ssum = jnp.sum(jnp.sum(x, axis=2, keepdims=True), axis=0)       # (C, 1)
        ssq = jnp.sum(jnp.sum(x * x, axis=2, keepdims=True), axis=0)    # (C, 1)
        # Single RMW of the tiny VMEM scratch per step (both columns at once).
        stats_ref[...] += jnp.concatenate([ssum, ssq], axis=1)     # (C, 2)

        @pl.when(n == pl.num_programs(1) - 1)
        def _finalize():
            mean = stats_ref[:, 0:1] * inv_count
            var = stats_ref[:, 1:2] * inv_count - mean * mean      # biased var
            stats_ref[...] = jnp.concatenate(
                [mean, jax.lax.rsqrt(var + _EPS)], axis=1)

    @pl.when(p == 1)
    def _norm_phase():
        bn, _, hw2 = o_ref.shape
        x = x_ref[...].astype(jnp.float32)                         # (Bn, C, HW)
        hw = x.shape[2]

        st = stats_ref[...]                                        # (C, 2)
        mean = st[:, 0:1].reshape(1, C, 1)
        inv = st[:, 1:2].reshape(1, C, 1)
        y = (x - mean) * inv                                       # (Bn, C, HW)

        # Fused stride-2 H+W subsample as one 0/1 selection matmul (exact).
        z = jnp.dot(y.reshape(bn * C, hw), sel_ref[...],
                    preferred_element_type=jnp.float32)            # (Bn*C, H2*W2)
        z = z.reshape(bn, C, hw2).astype(o_ref.dtype)

        # Fused channel zero-pad: zero only the pad rows, write body once.
        if pad > 0:
            zeros = jnp.zeros((bn, pad, hw2), o_ref.dtype)
            o_ref[:, :pad, :] = zeros
            o_ref[:, pad + C:, :] = zeros
        o_ref[:, pad:pad + C, :] = z


def batch_norm_resize_layer(x, *, block_n=None):
    """x: (N, C, H, W) -> (N, C + 2*(C//4), H//2, W//2)."""
    N, C, H, W = x.shape
    assert H % 2 == 0 and W % 2 == 0
    H2, W2 = H // 2, W // 2
    HW, HW2 = H * W, H2 * W2
    pad = C // 4
    C_out = C + 2 * pad

    # ---- choose a batch tile Bn (target ~2 MB per input tile, Bn | N) ----
    itemsize = jnp.dtype(x.dtype).itemsize
    bytes_per_n = C * HW * itemsize
    if block_n is None:
        bn = max(1, min(N, (2 * 1024 * 1024) // max(bytes_per_n, 1)))
        while N % bn != 0:
            bn -= 1
    else:
        bn = block_n
        assert N % bn == 0
    NB = N // bn

    # ---- precomputed 0/1 selection matrix: (H*W) -> (H2*W2), even rows/cols ----
    hw = jnp.arange(HW)
    hh, ww = hw // W, hw % W
    oo = jnp.arange(HW2)
    oi, oj = oo // W2, oo % W2
    sel = ((hh[:, None] == 2 * oi[None, :]) &
           (ww[:, None] == 2 * oj[None, :])).astype(jnp.float32)   # (HW, HW2)

    x_view = x.reshape(N, C, HW)                                   # free reshape

    # ---- explicit VMEM budget (double-buffered in/out blocks + sel + stats) ----
    in_bytes = bn * C * HW * itemsize
    out_bytes = bn * C_out * HW2 * itemsize
    sel_bytes = HW * HW2 * 4
    needed = 2 * (in_bytes + out_bytes) + 2 * sel_bytes + C * 2 * 4
    vmem_limit = int(min(64 * 1024 * 1024, max(16 * 1024 * 1024, 2 * needed)))

    kernel = functools.partial(
        _fused_kernel, inv_count=1.0 / float(N * H * W), pad=pad, C=C)

    # TODO(synk): on v7x a leading parallel axis could split the phase-0 stats
    # reduction across the two TensorCores; kept single-core for simplicity.
    out_flat = pl.pallas_call(
        kernel,
        out_shape=jax.ShapeDtypeStruct((N, C_out, HW2), x.dtype),
        grid=(2, NB),
        in_specs=[
            pl.BlockSpec((bn, C, HW), lambda p, n: (n, 0, 0)),
            pl.BlockSpec((HW, HW2), lambda p, n: (0, 0)),          # resident
        ],
        # Output block pinned to 0 during phase 0 (never flushed unwritten),
        # then follows n during phase 1 -> every HBM store carries real data.
        out_specs=pl.BlockSpec((bn, C_out, HW2), lambda p, n: (p * n, 0, 0)),
        scratch_shapes=[pltpu.VMEM((C, 2), jnp.float32)],
        compiler_params=pltpu.CompilerParams(
            dimension_semantics=("arbitrary", "arbitrary"),
            vmem_limit_bytes=vmem_limit),
    )(x_view, sel)

    return out_flat.reshape(N, C_out, H2, W2)                      # free reshape


def _reference(x):
    mean = jnp.mean(x, axis=(0, 2, 3), keepdims=True)
    var = jnp.mean((x - mean) ** 2, axis=(0, 2, 3), keepdims=True)
    y = (x - mean) * jax.lax.rsqrt(var + _EPS)
    y = y[:, :, ::2, ::2]
    pad = x.shape[1] // 4
    return jnp.pad(y, ((0, 0), (pad, pad), (0, 0), (0, 0)))


if __name__ == "__main__":
    key = jax.random.PRNGKey(0)
    x = jax.random.normal(key, (2, 4, 16, 16), dtype=jnp.float32)

    out = jax.jit(batch_norm_resize_layer)(x)
    out = jax.block_until_ready(out)

    ref = _reference(x)
    assert out.shape == (2, 6, 8, 8), out.shape
    assert jnp.allclose(out, ref, atol=1e-4, rtol=1e-5), float(
        jnp.max(jnp.abs(out - ref)))

    print("KERNEL_OK")
</pallas_src>

<mosaic_0001>
module attributes {stable_mosaic.version = 11 : i64} {
  func.func @_fused_kernel(%arg0: i32, %arg1: i32, %arg2: memref<2x4x256xf32, #tpu.memory_space<vmem>>, %arg3: memref<256x64xf32, #tpu.memory_space<vmem>>, %arg4: memref<2x6x64xf32, #tpu.memory_space<vmem>>, %arg5: memref<4x2xf32, #tpu.memory_space<vmem>>) attributes {dimension_semantics = [#tpu.dimension_semantics<arbitrary>, #tpu.dimension_semantics<arbitrary>], iteration_bounds = array<i64: 2, 1>, scalar_prefetch = 0 : i64, scratch_operands = 1 : i64, tpu.core_type = #tpu.core_type<tc>, window_params = [{transform_indices = @transform_0, window_bounds = array<i64: 2, 4, 256>}, {pipeline_mode = #tpu.pipeline_mode<synchronous>, transform_indices = @transform_1, window_bounds = array<i64: 256, 64>}, {transform_indices = @transform_2, window_bounds = array<i64: 2, 6, 64>}]} {
    %c0_i32 = arith.constant 0 : i32
    %0 = arith.cmpi eq, %arg0, %c0_i32 : i32
    %1 = arith.extui %0 : i1 to i32
    %c0_i32_0 = arith.constant 0 : i32
    %2 = arith.cmpi ne, %1, %c0_i32_0 : i32
    scf.if %2 {
      %c0_i32_2 = arith.constant 0 : i32
      %6 = arith.cmpi eq, %arg1, %c0_i32_2 : i32
      %7 = arith.extui %6 : i1 to i32
      %c0_i32_3 = arith.constant 0 : i32
      %8 = arith.cmpi ne, %7, %c0_i32_3 : i32
      scf.if %8 {
        %cst_15 = arith.constant 0.000000e+00 : f32
        %24 = vector.broadcast %cst_15 : f32 to vector<4x2xf32>
        %c0_16 = arith.constant 0 : index
        %c0_17 = arith.constant 0 : index
        %25 = vector.load %arg5[%c0_16, %c0_17] : memref<4x2xf32, #tpu.memory_space<vmem>>, vector<4x2xf32>
        tpu.vector_store %arg5[%c0_16, %c0_17], %24 {strides = array<i32>} : memref<4x2xf32, #tpu.memory_space<vmem>>, vector<4x2xf32>,
      } else {
      }
      %c0 = arith.constant 0 : index
      %c0_4 = arith.constant 0 : index
      %c0_5 = arith.constant 0 : index
      %9 = vector.load %arg2[%c0, %c0_4, %c0_5] : memref<2x4x256xf32, #tpu.memory_space<vmem>>, vector<2x4x256xf32>
      %cst = arith.constant dense<0.000000e+00> : vector<2x4xf32>
      %10 = vector.multi_reduction <add>, %9, %cst [2] : vector<2x4x256xf32> to vector<2x4xf32>
      %11 = vector.shape_cast %10 : vector<2x4xf32> to vector<2x4x1xf32>
      %cst_6 = arith.constant dense<0.000000e+00> : vector<4x1xf32>
      %12 = vector.multi_reduction <add>, %11, %cst_6 [0] : vector<2x4x1xf32> to vector<4x1xf32>
      %13 = arith.mulf %9, %9 : vector<2x4x256xf32>
      %cst_7 = arith.constant dense<0.000000e+00> : vector<2x4xf32>
      %14 = vector.multi_reduction <add>, %13, %cst_7 [2] : vector<2x4x256xf32> to vector<2x4xf32>
      %15 = vector.shape_cast %14 : vector<2x4xf32> to vector<2x4x1xf32>
      %cst_8 = arith.constant dense<0.000000e+00> : vector<4x1xf32>
      %16 = vector.multi_reduction <add>, %15, %cst_8 [0] : vector<2x4x1xf32> to vector<4x1xf32>
      %c0_9 = arith.constant 0 : index
      %c0_10 = arith.constant 0 : index
      %17 = vector.load %arg5[%c0_9, %c0_10] : memref<4x2xf32, #tpu.memory_space<vmem>>, vector<4x2xf32>
      %18 = tpu.concatenate %12, %16 in 1 : vector<4x1xf32>, vector<4x1xf32> -> vector<4x2xf32>
      %19 = arith.addf %17, %18 : vector<4x2xf32>
      %c0_11 = arith.constant 0 : index
      %c0_12 = arith.constant 0 : index
      %20 = vector.load %arg5[%c0_11, %c0_12] : memref<4x2xf32, #tpu.memory_space<vmem>>, vector<4x2xf32>
      tpu.vector_store %arg5[%c0_11, %c0_12], %19 {strides = array<i32>} : memref<4x2xf32, #tpu.memory_space<vmem>>, vector<4x2xf32>,
      %c0_i32_13 = arith.constant 0 : i32
      %21 = arith.cmpi eq, %arg1, %c0_i32_13 : i32
      %22 = arith.extui %21 : i1 to i32
      %c0_i32_14 = arith.constant 0 : i32
      %23 = arith.cmpi ne, %22, %c0_i32_14 : i32
      scf.if %23 {
        %c0_15 = arith.constant 0 : index
        %c0_16 = arith.constant 0 : index
        %24 = vector.load %arg5[%c0_15, %c0_16] : memref<4x2xf32, #tpu.memory_space<vmem>>, vector<4x1xf32>
        %cst_17 = arith.constant 0.001953125 : f32
        %25 = vector.broadcast %cst_17 : f32 to vector<4x1xf32>
        %26 = arith.mulf %24, %25 : vector<4x1xf32>
        %c0_18 = arith.constant 0 : index
        %c1 = arith.constant 1 : index
        %27 = vector.load %arg5[%c0_18, %c1] : memref<4x2xf32, #tpu.memory_space<vmem>>, vector<4x1xf32>
        %cst_19 = arith.constant 0.001953125 : f32
        %28 = vector.broadcast %cst_19 : f32 to vector<4x1xf32>
        %29 = arith.mulf %27, %28 : vector<4x1xf32>
        %30 = arith.mulf %26, %26 : vector<4x1xf32>
        %31 = arith.subf %29, %30 : vector<4x1xf32>
        %cst_20 = arith.constant 9.99999974E-6 : f32
        %32 = vector.broadcast %cst_20 : f32 to vector<4x1xf32>
        %33 = arith.addf %31, %32 : vector<4x1xf32>
        %34 = math.rsqrt %33 : vector<4x1xf32>
        %35 = tpu.concatenate %26, %34 in 1 : vector<4x1xf32>, vector<4x1xf32> -> vector<4x2xf32>
        %c0_21 = arith.constant 0 : index
        %c0_22 = arith.constant 0 : index
        %36 = vector.load %arg5[%c0_21, %c0_22] : memref<4x2xf32, #tpu.memory_space<vmem>>, vector<4x2xf32>
        tpu.vector_store %arg5[%c0_21, %c0_22], %35 {strides = array<i32>} : memref<4x2xf32, #tpu.memory_space<vmem>>, vector<4x2xf32>,
      } else {
      }
    } else {
    }
    %c1_i32 = arith.constant 1 : i32
    %3 = arith.cmpi eq, %arg0, %c1_i32 : i32
    %4 = arith.extui %3 : i1 to i32
    %c0_i32_1 = arith.constant 0 : i32
    %5 = arith.cmpi ne, %4, %c0_i32_1 : i32
    scf.if %5 {
      %c0 = arith.constant 0 : index
      %c0_2 = arith.constant 0 : index
      %c0_3 = arith.constant 0 : index
      %6 = vector.load %arg2[%c0, %c0_2, %c0_3] : memref<2x4x256xf32, #tpu.memory_space<vmem>>, vector<2x4x256xf32>
      %c0_4 = arith.constant 0 : index
      %c0_5 = arith.constant 0 : index
      %7 = vector.load %arg5[%c0_4, %c0_5] : memref<4x2xf32, #tpu.memory_space<vmem>>, vector<4x2xf32>
      %8 = vector.extract_strided_slice %7 {offsets = [0, 0], sizes = [4, 1], strides = [1, 1]} : vector<4x2xf32> to vector<4x1xf32>
      %9 = vector.shape_cast %8 : vector<4x1xf32> to vector<1x4x1xf32>
      %10 = vector.extract_strided_slice %7 {offsets = [0, 1], sizes = [4, 1], strides = [1, 1]} : vector<4x2xf32> to vector<4x1xf32>
      %11 = vector.shape_cast %10 : vector<4x1xf32> to vector<1x4x1xf32>
      %12 = vector.broadcast %9 : vector<1x4x1xf32> to vector<2x4x256xf32>
      %13 = arith.subf %6, %12 : vector<2x4x256xf32>
      %14 = vector.broadcast %11 : vector<1x4x1xf32> to vector<2x4x256xf32>
      %15 = arith.mulf %13, %14 : vector<2x4x256xf32>
      %16 = vector.shape_cast %15 : vector<2x4x256xf32> to vector<8x256xf32>
      %c0_6 = arith.constant 0 : index
      %c0_7 = arith.constant 0 : index
      %17 = vector.load %arg3[%c0_6, %c0_7] : memref<256x64xf32, #tpu.memory_space<vmem>>, vector<256x64xf32>
      %cst = arith.constant dense<0.000000e+00> : vector<8x64xf32>
      %18 = tpu.matmul %16, %17, %cst {dimension_numbers = #tpu.dot_dimension_numbers<[1], [0], [0], [1], [0, 0, 1, 1], [], []>} : vector<8x256xf32>, vector<256x64xf32>, vector<8x64xf32> -> vector<8x64xf32>
      %19 = vector.shape_cast %18 : vector<8x64xf32> to vector<2x4x64xf32>
      %cst_8 = arith.constant 0.000000e+00 : f32
      %20 = vector.broadcast %cst_8 : f32 to vector<2x1x64xf32>
      %c0_9 = arith.constant 0 : index
      %c0_10 = arith.constant 0 : index
      %c0_11 = arith.constant 0 : index
      %21 = vector.load %arg4[%c0_9, %c0_10, %c0_11] : memref<2x6x64xf32, #tpu.memory_space<vmem>>, vector<2x1x64xf32>
      tpu.vector_store %arg4[%c0_9, %c0_10, %c0_11], %20 {strides = array<i32>} : memref<2x6x64xf32, #tpu.memory_space<vmem>>, vector<2x1x64xf32>,
      %c0_12 = arith.constant 0 : index
      %c5 = arith.constant 5 : index
      %c0_13 = arith.constant 0 : index
      %22 = vector.load %arg4[%c0_12, %c5, %c0_13] : memref<2x6x64xf32, #tpu.memory_space<vmem>>, vector<2x1x64xf32>
      tpu.vector_store %arg4[%c0_12, %c5, %c0_13], %20 {strides = array<i32>} : memref<2x6x64xf32, #tpu.memory_space<vmem>>, vector<2x1x64xf32>,
      %c0_14 = arith.constant 0 : index
      %c1 = arith.constant 1 : index
      %c0_15 = arith.constant 0 : index
      %23 = vector.load %arg4[%c0_14, %c1, %c0_15] : memref<2x6x64xf32, #tpu.memory_space<vmem>>, vector<2x4x64xf32>
      tpu.vector_store %arg4[%c0_14, %c1, %c0_15], %19 {strides = array<i32>} : memref<2x6x64xf32, #tpu.memory_space<vmem>>, vector<2x4x64xf32>,
    } else {
    }
    return
  }
  func.func @transform_0(%arg0: i32, %arg1: i32) -> (i32, i32, i32) {
    %c0_i32 = arith.constant 0 : i32
    %c0_i32_0 = arith.constant 0 : i32
    %c0_i32_1 = arith.constant 0 : i32
    return %arg1, %c0_i32, %c0_i32_0 : i32, i32, i32
  }
  func.func @transform_1(%arg0: i32, %arg1: i32) -> (i32, i32) {
    %c0_i32 = arith.constant 0 : i32
    %c0_i32_0 = arith.constant 0 : i32
    %c0_i32_1 = arith.constant 0 : i32
    return %c0_i32, %c0_i32_0 : i32, i32
  }
  func.func @transform_2(%arg0: i32, %arg1: i32) -> (i32, i32, i32) {
    %0 = arith.muli %arg0, %arg1 : i32
    %c0_i32 = arith.constant 0 : i32
    %c0_i32_0 = arith.constant 0 : i32
    %c0_i32_1 = arith.constant 0 : i32
    return %0, %c0_i32, %c0_i32_0 : i32, i32, i32
  }
}

</mosaic_0001>

<bundles_post_ra>
// kernel: batch_norm_resize_layer.1
= control target key start
LH: loop header
LB: loop body
LE: loop exit
PB: predicated region body
PF: predicated region fallthrough
CT: control target
= control target key end

     0   :  { %s545_s9 = smov 0   ;;  %s547_s10 = smov 0   ;;  %s719_s0 = inlined_call_operand.vmem [shape: f32[2,4,256], index: 0, kind: input, shape index: {}]   ;;  %s720_s1 = inlined_call_operand.vmem [shape: f32[256,64], index: 1, kind: input, shape index: {}]   ;;  %s721_s2 = inlined_call_operand.vmem [shape: f32[2,6,64], index: 2, kind: output, shape index: {}]  }
   0x1   :  { %s549_s11 = smov 0  }
   0x2 LB: > { %s24_s12 = sadd.s32 1, %s518_s10  ;;  %p459_p0 = scmp.ge.s32.totalorder %s522_s11, 1  ;;  %s522_s11 = sphi %s549_s11, %s12_s11   ;;  %s518_s10 = sphi %s547_s10, %s723_s10   ;;  %s514_s9 = sphi %s545_s9, %s722_s9  }
   0x3   : > { %p26_p1 = scmp.ge.s32.totalorder %s24_s12, 2  ;;  %p128_p2 = scmp.lt.s32.totalorder %s522_s11, 3 }
   0x5   : > { %s725_s12 = smov (%p26_p1, %s24_s12), 0  ;;  %p129_p3 = pnand %p459_p0, %p128_p2 }
   0x6   : > { %p460_p4 = scmp.ne.s32.totalorder (!%p129_p3), %s514_s9, 0 }
   0x7   : > { %132 = sbr.rel (%p129_p3) target bundleno = 571 (0x23b), region = 28 }
   0xc   : > { %170 = sbr.rel (%p460_p4) target bundleno = 294 (0x126), region = 32  ;;  %s525_s17 = smov (!%p460_p4), 1  }
  0x11   : > { %v177_v0 = vld [vmem:[%s719_s0] sm:$0xff]  ;;  %v178_v1 = vld [vmem:[%s719_s0 + $0x8] sm:$0xff]  ;;  %vm192_vm0 = vcmask 1043456   ;;  %vm175_vm1 = vcmask 11264   ;;  %v524_v24 = vmov 0.0   ;;  %vm235_vm2 = vcmask 7168  }
  0x12   : > { %181 = vst [vmem:[#allocation1] ss:$2 sm:$0xff] %v177_v0  ;;  %v206_v2 = vmul.f32 %v177_v0, %v177_v0  ;;  %v207_v3 = vmul.f32 %v178_v1, %v178_v1 }
  0x13   : > { %185 = vst [vmem:[#allocation1 + $0x10] ss:$2 sm:$0xff] %v178_v1 }
  0x14   : > { %176 = vst.msk [vmem:[#allocation2] sm:$0xf] %vm175_vm1, %v524_v24 }
  0x19   : > { %v182_v4 = vld.sshfl [vmem:[#allocation1] sm:$0xff pattern:$0x75316420]  ;;  %v183_v5 = vld.sshfl [vmem:[#allocation1 + $0x8] sm:$0xff pattern:$0x75316420] }
  0x1a   : > { %v193_v6 = vsel %vm192_vm0, %v182_v4, 0.0  ;;  %v194_v7 = vsel %vm192_vm0, %v183_v5, 0.0  ;;  %210 = vst [vmem:[#allocation1] ss:$2 sm:$0xff] %v206_v2 }
  0x1b   : > { %v195_v8 = vadd.f32 %v194_v7, %v193_v6  ;;  %v186_v9 = vld.sshfl [vmem:[#allocation1 + $0x10] sm:$0xff pattern:$0x75316420]  ;;  %v187_v10 = vld.sshfl [vmem:[#allocation1 + $0x18] sm:$0xff pattern:$0x75316420] }
  0x1c   : > { %214 = vst [vmem:[#allocation1 + $0x10] ss:$2 sm:$0xff] %v207_v3  ;;  %v198_v11 = vsel %vm192_vm0, %v186_v9, 0.0  ;;  %v199_v12 = vsel %vm192_vm0, %v187_v10, 0.0  ;;  %v234_v35 = vld [vmem:[#allocation2] sm:$0xf] }
  0x1d   : > { %196 = vadd.xlane.f32.xlu0 %v195_v8  ;;  %v200_v15 = vadd.f32 %v199_v12, %v198_v11 }
  0x21   : > { %v211_v13 = vld.sshfl [vmem:[#allocation1] sm:$0xff pattern:$0x75316420]  ;;  %v212_v14 = vld.sshfl [vmem:[#allocation1 + $0x8] sm:$0xff pattern:$0x75316420] }
  0x22   : > { %v221_v16 = vsel %vm192_vm0, %v211_v13, 0.0  ;;  %v222_v17 = vsel %vm192_vm0, %v212_v14, 0.0 }
  0x23   : > { %v223_v18 = vadd.f32 %v222_v17, %v221_v16  ;;  %v215_v19 = vld.sshfl [vmem:[#allocation1 + $0x10] sm:$0xff pattern:$0x75316420]  ;;  %v216_v20 = vld.sshfl [vmem:[#allocation1 + $0x18] sm:$0xff pattern:$0x75316420] }
  0x24   : > { %v226_v21 = vsel %vm192_vm0, %v215_v19, 0.0  ;;  %v227_v22 = vsel %vm192_vm0, %v216_v20, 0.0 }
  0x25   : > { %224 = vadd.xlane.f32.xlu1 %v223_v18  ;;  %201 = vadd.xlane.f32.xlu0 %v200_v15  ;;  %v228_v23 = vadd.f32 %v227_v22, %v226_v21 }
  0x2d   : > { %229 = vadd.xlane.f32.xlu1 %v228_v23 }
  0x90   : > { %v197_v25 = vpop.xlane.xlu0 %196 }
  0x91   : > { %v203_v28 = vsel %vm192_vm0, %v197_v25, 0.0 }
  0x98   : > { %v225_v26 = vpop.xlane.xlu1 %224  ;;  %v202_v27 = vpop.xlane.xlu0 %201 }
  0x99   : > { %v204_v29 = vsel %vm192_vm0, %v202_v27, 0.0  ;;  %v231_v31 = vsel %vm192_vm0, %v225_v26, 0.0 }
  0x9a   : > { %v205_v33 = vadd.f32 %v204_v29, %v203_v28 }
  0xa0   : > { %v230_v30 = vpop.xlane.xlu1 %229 }
  0xa1   : > { %v232_v32 = vsel %vm192_vm0, %v230_v30, 0.0 }
  0xa2   : > { %v233_v34 = vadd.f32 %v232_v32, %v231_v31 }
  0xa4   : > { %v236_v36 = vsel %vm235_vm2, %v205_v33, %v233_v34 }
  0xa5   : > { %v237_v37 = vadd.f32 %v236_v36, %v234_v35 }
  0xa7   : > { %239 = vst.msk [vmem:[#allocation2] sm:$0xf] %vm175_vm1, %v237_v37 }
  0xae   : > { %v243_v38 = vld [vmem:[#allocation2] sm:$0xf] }
  0xaf   : > { %v244_v39 = vmul.f32 0.001953125, %v243_v38 }
  0xb1   : > { %v245_v40 = vmul.f32 %v244_v39, %v244_v39 }
  0xb3   : > { %247 = vrot.lane.b32.xlu2 %v245_v40, %s525_s17 }
 0x10d   : > { %v248_v41 = vpop.permute.xlu2 %247 }
 0x10e   : > { %v250_v42 = vsub.f32 %v244_v39, %v248_v41 }
 0x110   : > { %v251_v43 = vadd.f32 1e-05, %v250_v42 }
 0x112   : > { %496 = vrsqrt.f32 %v251_v43  ;;  %vm258_vm4 = vweird.f32 %v251_v43 }
 0x118   : > { %v497_v44 = vpop.eup %496 }
 0x119   : > { %v253_v45 = vmul.f32 %v497_v44, %v251_v43  ;;  %vm259_vm3 = vweird.f32 %v497_v44 }
 0x11a   : > { %vm260_vm5 = vmor %vm258_vm4, %vm259_vm3 }
 0x11b   : > { %v254_v46 = vmul.f32 %v497_v44, %v253_v45 }
 0x11d   : > { %v255_v47 = vmul.f32 0.5, %v254_v46 }
 0x11f   : > { %v256_v48 = vsub.f32 1.5, %v255_v47 }
 0x121   : > { %v257_v49 = vmul.f32 %v497_v44, %v256_v48 }
 0x123   : > { %v261_v50 = vsel %vm260_vm5, %v497_v44, %v257_v49 }
 0x124   : > { %v262_v51 = vsel %vm235_vm2, %v244_v39, %v261_v50 }
 0x125   : > { %263 = vst.msk [vmem:[#allocation2] sm:$0xf] %vm175_vm1, %v262_v51 }
 0x126 PF: > { %p461_p5 = scmp.ne.s32.totalorder %s514_s9, 1 }
 0x128   : > { %267 = sbr.rel (%p461_p5) target bundleno = 571 (0x23b), region = 44 }
 0x12d   : > { %v270_v52 = vld [vmem:[#allocation2] sm:$0xf]  ;;  %v307_v53 = vld [vmem:[%s720_s1 + $0x78] sm:$0xff]  ;;  %v526_v55 = vmov 0   ;;  %v306_v56 = vld [vmem:[%s720_s1 + $0x70] sm:$0xff]  ;;  %v527_v0 = vmov 1  }
 0x12e   : > { %v323_v54 = vld [vmem:[%s720_s1 + $0xf8] sm:$0xff]  ;;  %498 = vset.pattern.permute.xlu0 %v526_v55  ;;  %333 = vmatpush.msra.mxu0 %v307_v53  ;;  %v322_v57 = vld [vmem:[%s720_s1 + $0xf0] sm:$0xff]  ;;  %v305_v58 = vld [vmem:[%s720_s1 + $0x68] sm:$0xff]  ;;  %v528_v23 = vmov 839922192   ;;  %vm376_vm6 = vcmask 516096  }
 0x12f   : > { %273 = vperm.xlu0 %498, %v270_v52   ;;  %353 = vmatpush.msra.mxu1 %v323_v54  ;;  %v321_v59 = vld [vmem:[%s720_s1 + $0xe8] sm:$0xff]  ;;  %v304_v60 = vld [vmem:[%s720_s1 + $0x60] sm:$0xff]  ;;  %v303_v62 = vld [vmem:[%s720_s1 + $0x58] sm:$0xff]  ;;  %v276_v24 = vunpack.c.l.s4 %v528_v23  ;;  %v529_v38 = vmov 0.0   ;;  %vm381_vm7 = vcmask 519168  }
 0x130   : > { %334 = vmatpush.msra.mxu0 %v306_v56  ;;  %v320_v61 = vld [vmem:[%s720_s1 + $0xe0] sm:$0xff]  ;;  %v319_v63 = vld [vmem:[%s720_s1 + $0xd8] sm:$0xff]  ;;  %v302_v1 = vld [vmem:[%s720_s1 + $0x50] sm:$0xff]  ;;  %377 = vst.msk [vmem:[%s721_s2] sm:$0x1] %vm376_vm6, %v529_v38 }
 0x131   : > { %354 = vmatpush.msra.mxu1 %v322_v57  ;;  %v318_v2 = vld [vmem:[%s720_s1 + $0xd0] sm:$0xff]  ;;  %v301_v3 = vld [vmem:[%s720_s1 + $0x48] sm:$0xff]  ;;  %v300_v5 = vld [vmem:[%s720_s1 + $0x40] sm:$0xff]  ;;  %v277_v26 = vunpack.c.0.s8 %v276_v24  ;;  %378 = vst.msk [vmem:[%s721_s2 + $0x8] sm:$0x1] %vm376_vm6, %v529_v38 }
 0x132   : > { %335 = vmatpush.msra.mxu0 %v305_v58  ;;  %v317_v4 = vld [vmem:[%s720_s1 + $0xc8] sm:$0xff]  ;;  %v316_v6 = vld [vmem:[%s720_s1 + $0xc0] sm:$0xff]  ;;  %v299_v7 = vld [vmem:[%s720_s1 + $0x38] sm:$0xff]  ;;  %379 = vst.msk [vmem:[%s721_s2 + $0x5] sm:$0x1] %vm376_vm6, %v529_v38 }
 0x133   : > { %355 = vmatpush.msra.mxu1 %v321_v59  ;;  %v315_v8 = vld [vmem:[%s720_s1 + $0xb8] sm:$0xff]  ;;  %v298_v9 = vld [vmem:[%s720_s1 + $0x30] sm:$0xff]  ;;  %v297_v11 = vld [vmem:[%s720_s1 + $0x28] sm:$0xff]  ;;  %380 = vst.msk [vmem:[%s721_s2 + $0xd] sm:$0x1] %vm376_vm6, %v529_v38 }
 0x134   : > { %336 = vmatpush.msra.mxu0 %v304_v60  ;;  %v314_v10 = vld [vmem:[%s720_s1 + $0xb0] sm:$0xff]  ;;  %v313_v12 = vld [vmem:[%s720_s1 + $0xa8] sm:$0xff]  ;;  %v296_v13 = vld [vmem:[%s720_s1 + $0x20] sm:$0xff] }
 0x135   : > { %356 = vmatpush.msra.mxu1 %v320_v61  ;;  %v312_v14 = vld [vmem:[%s720_s1 + $0xa0] sm:$0xff]  ;;  %v295_v15 = vld [vmem:[%s720_s1 + $0x18] sm:$0xff]  ;;  %v294_v17 = vld [vmem:[%s720_s1 + $0x10] sm:$0xff] }
 0x136   : > { %337 = vmatpush.msra.mxu0 %v303_v62  ;;  %v311_v16 = vld [vmem:[%s720_s1 + $0x98] sm:$0xff]  ;;  %v310_v18 = vld [vmem:[%s720_s1 + $0x90] sm:$0xff]  ;;  %v293_v19 = vld [vmem:[%s720_s1 + $0x8] sm:$0xff] }
 0x137   : > { %499 = vset.pattern.permute.xlu0 %v527_v0  ;;  %357 = vmatpush.msra.mxu1 %v319_v63  ;;  %v309_v20 = vld [vmem:[%s720_s1 + $0x88] sm:$0xff]  ;;  %v292_v21 = vld [vmem:[%s720_s1] sm:$0xff] }
 0x138   : > { %283 = vperm.xlu0 %499, %v270_v52   ;;  %338 = vmatpush.msra.mxu0 %v302_v1  ;;  %v308_v22 = vld [vmem:[%s720_s1 + $0x80] sm:$0xff]  ;;  %v269_v29 = vld [vmem:[%s719_s0 + $0x8] sm:$0xff] }
 0x139   : > { %358 = vmatpush.msra.mxu1 %v318_v2  ;;  %v268_v28 = vld [vmem:[%s719_s0] sm:$0xff] }
 0x13a   : > { %339 = vmatpush.msra.mxu0 %v301_v3 }
 0x13b   : > { %359 = vmatpush.msra.mxu1 %v317_v4 }
 0x13c   : > { %340 = vmatpush.msra.mxu0 %v300_v5 }
 0x13d   : > { %360 = vmatpush.msra.mxu1 %v316_v6 }
 0x13e   : > { %341 = vmatpush.msra.mxu0 %v299_v7 }
 0x13f   : > { %361 = vmatpush.msra.mxu1 %v315_v8 }
 0x140   : > { %342 = vmatpush.msra.mxu0 %v298_v9 }
 0x141   : > { %362 = vmatpush.msra.mxu1 %v314_v10 }
 0x142   : > { %343 = vmatpush.msra.mxu0 %v297_v11 }
 0x143   : > { %363 = vmatpush.msra.mxu1 %v313_v12 }
 0x144   : > { %344 = vmatpush.msra.mxu0 %v296_v13 }
 0x145   : > { %364 = vmatpush.msra.mxu1 %v312_v14 }
 0x146   : > { %345 = vmatpush.msra.mxu0 %v295_v15 }
 0x147   : > { %365 = vmatpush.msra.mxu1 %v311_v16 }
 0x148   : > { %346 = vmatpush.msra.mxu0 %v294_v17 }
 0x149   : > { %366 = vmatpush.msra.mxu1 %v310_v18 }
 0x14a   : > { %347 = vmatpush.msra.mxu0 %v293_v19 }
 0x14b   : > { %367 = vmatpush.msra.mxu1 %v309_v20 }
 0x14c   : > { %348 = vmatpush.msra.mxu0 %v292_v21 }
 0x14d   : > { %368 = vmatpush.msra.mxu1 %v308_v22 }
 0x1a1   : > { %v274_v25 = vpop.permute.xlu0 %273 }
 0x1a2   : > { %v278_v27 = vperm.slane %v274_v25, %v277_v26 }
 0x1a4   : > { %v280_v31 = vsub.f32 %v268_v28, %v278_v27  ;;  %v281_v32 = vsub.f32 %v269_v29, %v278_v27 }
 0x1aa   : > { %v284_v30 = vpop.permute.xlu0 %283 }
 0x1ab   : > { %v288_v33 = vperm.slane %v284_v30, %v277_v26 }
 0x1ad   : > { %v290_v34 = vmul.f32 %v288_v33, %v280_v31  ;;  %v291_v35 = vmul.f32 %v288_v33, %v281_v32 }
 0x1af   : > { %326 = vst [vmem:[#allocation1] ss:$2 sm:$0xff] %v290_v34 }
 0x1b0   : > { %328 = vst [vmem:[#allocation1 + $0x1] ss:$2 sm:$0xff] %v291_v35 }
 0x1b7   : > { %v329_v36 = vld.sshfl [vmem:[#allocation1] sm:$0xff pattern:$0x75316420]  ;;  %v330_v37 = vld.sshfl [vmem:[#allocation1 + $0x8] sm:$0xff pattern:$0x75316420] }
 0x1b8   : > { %349 = vmatmul.f32.vlgmr.msra.gmra.mxu0 %v329_v36  ;;  %369 = vmatmul.f32.vlgmr.msra.gmra.mxu1 %v330_v37 }
 0x235   : > { %v350_v39 = vpop.f32.mrf.mxu0  ;;  %v370_v40 = vpop.f32.mrf.mxu1 }
 0x236   : > { %v371_v41 = vadd.f32 %v370_v40, %v350_v39 }
 0x238   : > { %v374_v42 = vrot.slane %v371_v41, 4  ;;  %382 = vst.msk [vmem:[%s721_s2 + $0x1] sm:$0xf] %vm381_vm7, %v371_v41 }
 0x23a   : > { %383 = vst.msk [vmem:[%s721_s2 + $0x9] sm:$0xf] %vm381_vm7, %v374_v42 }
 0x23b PF: > { %s12_s11 = sadd.s32 1, %s522_s11   ;;  %s722_s9 = smov %s518_s10 }
 0x23c   : > { %p9_p6 = scmp.ge.s32.totalorder %s12_s11, 4   ;;  %s723_s10 = smov %s725_s12 }
 0x23e   :  { %11 = sbr.rel (!%p9_p6) target bundleno = 2 (0x2), region = 77 }

</bundles_post_ra>
